<compile_context>
chip_gen: v6e
topology: v6e:2x2x1
jax: 0.10.0
libtpu: 0.0.40
codegen_flags: <defaults>
</compile_context>

<pallas_src>
import jax
import jax.numpy as jnp
from jax import lax
from jax.experimental import pallas as pl
from jax.experimental.pallas import tpu as pltpu

# ----------------------------------------------------------------------------
# Model configuration (synthesized head, same as previous version)
# ----------------------------------------------------------------------------
NB = 2        # batch
C_IN = 4      # input channels
IMG = 16      # input spatial size (16x16)
C1 = 8        # conv1: 3x3 / stride 2 / pad 1  -> 8x8
C2 = 16       # conv2: 3x3 / stride 2 / pad 1  -> 4x4
Z_DIM = 32    # latent size

H1 = IMG // 2           # 8
H2 = H1 // 2            # 4
FC_IN = C2 * H2 * H2    # 256
GR = 4 * NB             # rows per parity group of the conv1 output (a_r, n)
OUT_W = 128             # packed output lanes: mu | logvar | z | pad


# ----------------------------------------------------------------------------
# The fused kernel: conv1 + ReLU + conv2 + ReLU + (fc_mu|fc_logvar) + reparam
# ----------------------------------------------------------------------------
def _encoder_head_kernel(x1_ref, w1_ref, b1_ref, w2_ref, b2_ref,
                         wfc_ref, bfc_ref, eps_ref, out_ref):
    f32, bf16 = jnp.float32, jnp.bfloat16

    # ---- conv1: ONE MXU contraction ----------------------------------------
    # x1 : [4*GR, 4*9*C_IN] rows=(g=(br,bc), a_r, n), cols=(a_c, i, j, ci)
    # w1 : [4*9*C_IN, 4*C1] block-diagonal (kron) over a_c
    h1 = jnp.dot(x1_ref[...], w1_ref[...], preferred_element_type=f32)
    h1 = jnp.maximum(h1 + b1_ref[...], 0.0)          # [32, 32] (g,a_r,n) x (a_c,c1)

    # ---- conv2: 9-tap LHS assembled from register-held parity groups -------
    g0 = h1[0 * GR:1 * GR, :]     # conv1 rows/cols with parity (br,bc)=(0,0)
    g1 = h1[1 * GR:2 * GR, :]     # (0,1)
    g2 = h1[2 * GR:3 * GR, :]     # (1,0)
    g3 = h1[3 * GR:4 * GR, :]     # (1,1)
    zrow = jnp.zeros((NB, 4 * C1), f32)
    zcol = jnp.zeros((GR, C1), f32)

    def rshift(a):                # conv2 top padding: a_r -> a_r - 1
        return jnp.concatenate([zrow, a[:3 * NB, :]], axis=0)

    def cshift(a):                # conv2 left padding: a_c -> a_c - 1
        return jnp.concatenate([zcol, a[:, :3 * C1]], axis=1)

    lhs2 = jnp.concatenate(
        [rshift(cshift(g3)), rshift(g2), rshift(g3),   # taps (0,0) (0,1) (0,2)
         cshift(g1),         g0,         g1,           # taps (1,0) (1,1) (1,2)
         cshift(g3),         g2,         g3],          # taps (2,0) (2,1) (2,2)
        axis=1).astype(bf16)                           # [8, 288] = [(ho2,n), (tap,wo2,c1)]

    h2 = jnp.dot(lhs2, w2_ref[...], preferred_element_type=f32)
    h2 = jnp.maximum(h2 + b2_ref[...], 0.0)            # [8, 64] (ho2,n) x (wo2,c2)

    # ---- fused fc_mu | fc_logvar: ONE matmul --------------------------------
    lhs_fc = jnp.concatenate(
        [h2[ho * NB:(ho + 1) * NB, :] for ho in range(H2)],
        axis=1).astype(bf16)                            # [NB, 256] cols=(ho2,wo2,c2)
    fc = jnp.dot(lhs_fc, wfc_ref[...], preferred_element_type=f32) + bfc_ref[...]

    # ---- reparameterization + single full-width lane-dense store -----------
    mu = fc[:, 0:Z_DIM]
    logvar = fc[:, Z_DIM:2 * Z_DIM]
    z = eps_ref[...] * jnp.exp(0.5 * logvar) + mu       # exp on EUP, f32 epilogue
    out_ref[...] = jnp.concatenate(
        [fc[:, 0:2 * Z_DIM], z, jnp.zeros((NB, OUT_W - 3 * Z_DIM), f32)],
        axis=1).astype(out_ref.dtype)                   # one unmasked [NB,128] store


# ----------------------------------------------------------------------------
# Host-side ONE-TIME weight repacking (hoisted out of the per-call jit path)
# ----------------------------------------------------------------------------
def pack_params(params):
    eye4 = jnp.eye(4, dtype=jnp.float32)

    # conv1: im2col weight [9*C_IN, C1] (rows=(i,j,ci)), kron'd block-diag over a_c
    w1_flat = params["conv1_w"].transpose(2, 3, 1, 0).reshape(9 * C_IN, C1)
    w1b = jnp.kron(eye4, w1_flat)                                      # [144, 32]
    b1t = jnp.tile(params["conv1_b"], 4)[None, :]                      # [1, 32]

    # conv2: per-tap kron blocks stacked along K (rows=(tap, wo2, c1))
    w2 = params["conv2_w"]
    w2b = jnp.concatenate(
        [jnp.kron(eye4, w2[:, :, i, j].T) for i in range(3) for j in range(3)],
        axis=0)                                                        # [288, 64]
    b2t = jnp.tile(params["conv2_b"], 4)[None, :]                      # [1, 64]

    # fc: fuse mu|logvar, pad to 128 lanes, permute rows (c2,ho2,wo2)->(ho2,wo2,c2)
    wcat = jnp.concatenate([params["fc_mu_w"], params["fc_lv_w"]], axis=1)   # [256, 64]
    wcat = jnp.pad(wcat, ((0, 0), (0, OUT_W - 2 * Z_DIM)))                   # [256, 128]
    wfc = wcat.reshape(C2, H2, H2, OUT_W).transpose(1, 2, 0, 3).reshape(FC_IN, OUT_W)
    bfc = jnp.concatenate([params["fc_mu_b"], params["fc_lv_b"],
                           jnp.zeros((OUT_W - 2 * Z_DIM,), jnp.float32)])[None, :]

    return dict(w1b=w1b.astype(jnp.bfloat16), b1t=b1t.astype(jnp.float32),
                w2b=w2b.astype(jnp.bfloat16), b2t=b2t.astype(jnp.float32),
                wfc=wfc.astype(jnp.bfloat16), bfc=bfc.astype(jnp.float32))


# ----------------------------------------------------------------------------
# Host-side input im2col (tiny: ~9 KB bf16), parity-grouped for conv2 reuse
# ----------------------------------------------------------------------------
def prep_input(imgs):
    """[NB, C_IN, 16, 16] NCHW -> conv1 im2col LHS [4*4*NB, 4*9*C_IN] = [32, 144].
    Rows = (parity group g=(br,bc), a_r, n); cols = (a_c, i, j, ci).
    Conv1 output position is (ho1, wo1) = (2*a_r + br, 2*a_c + bc)."""
    n, c, _, _ = imgs.shape
    xp = jnp.pad(imgs, ((0, 0), (0, 0), (1, 1), (1, 1)))      # conv pad=1 -> 18x18

    def group_block(br, bc):
        rr = 2 * (2 * jnp.arange(4)[:, None] + br) + jnp.arange(3)[None, :]   # [a_r, i]
        cc = 2 * (2 * jnp.arange(4)[:, None] + bc) + jnp.arange(3)[None, :]   # [a_c, j]
        patch = xp[:, :, rr[:, :, None, None], cc[None, None, :, :]]          # [n,c,4,3,4,3]
        blk = patch.transpose(2, 0, 4, 3, 5, 1)                # (a_r, n, a_c, i, j, c)
        return blk.reshape(4 * n, 4 * 9 * c)

    x1 = jnp.concatenate(
        [group_block(br, bc) for (br, bc) in [(0, 0), (0, 1), (1, 0), (1, 1)]], axis=0)
    return x1.astype(jnp.bfloat16)                             # [32, 144]


# ----------------------------------------------------------------------------
# pallas_call wrapper + forward
# ----------------------------------------------------------------------------
def fused_encoder_head(x1, pk, eps):
    vmem = pl.BlockSpec(memory_space=pltpu.MemorySpace.VMEM)   # whole array in VMEM
    return pl.pallas_call(
        _encoder_head_kernel,
        out_shape=jax.ShapeDtypeStruct((NB, OUT_W), jnp.float32),
        in_specs=[vmem] * 8,
        out_specs=vmem,
        # No grid: single launch, everything VMEM-resident.  At larger batch /
        # resolution, grid over batch rows with
        # dimension_semantics=("parallel",) and constant weight index_maps.
    )(x1, pk["w1b"], pk["b1t"], pk["w2b"], pk["b2t"], pk["wfc"], pk["bfc"], eps)


@jax.jit
def encoder_head_forward(packed, imgs, eps_key):
    """Same contract as encoder_head.forward: imgs -> (z_x, means, sigmas).
    NOTE: `sigmas` is the raw log-variance (as in the torch module).
    `packed` are the once-repacked weights from pack_params()."""
    x1 = prep_input(imgs)
    eps = jax.random.normal(eps_key, (imgs.shape[0], Z_DIM), jnp.float32)
    out = fused_encoder_head(x1, packed, eps)            # [NB, 128] = mu|logvar|z|pad
    mu = out[:, 0:Z_DIM]
    logvar = out[:, Z_DIM:2 * Z_DIM]
    z = out[:, 2 * Z_DIM:3 * Z_DIM]
    # (the torch module prints means/sigmas here; omitted to keep stdout clean)
    return z, mu, logvar


# ----------------------------------------------------------------------------
# Parameters + pure-JAX reference (for correctness verification)
# ----------------------------------------------------------------------------
def init_params(key, in_ch=C_IN, z_dim=Z_DIM):
    ks = jax.random.split(key, 8)
    return {
        "conv1_w": 0.1 * jax.random.normal(ks[0], (C1, in_ch, 3, 3), jnp.float32),
        "conv1_b": 0.1 * jax.random.normal(ks[1], (C1,), jnp.float32),
        "conv2_w": 0.1 * jax.random.normal(ks[2], (C2, C1, 3, 3), jnp.float32),
        "conv2_b": 0.1 * jax.random.normal(ks[3], (C2,), jnp.float32),
        "fc_mu_w": 0.05 * jax.random.normal(ks[4], (FC_IN, z_dim), jnp.float32),
        "fc_mu_b": 0.05 * jax.random.normal(ks[5], (z_dim,), jnp.float32),
        "fc_lv_w": 0.05 * jax.random.normal(ks[6], (FC_IN, z_dim), jnp.float32),
        "fc_lv_b": 0.05 * jax.random.normal(ks[7], (z_dim,), jnp.float32),
    }


def reference_forward(params, imgs, eps):
    """Pure-JAX f32 reference of the same head."""
    dn = ("NCHW", "OIHW", "NCHW")
    h = lax.conv_general_dilated(imgs, params["conv1_w"], (2, 2), ((1, 1), (1, 1)),
                                 dimension_numbers=dn)
    h = jnp.maximum(h + params["conv1_b"][None, :, None, None], 0.0)
    h = lax.conv_general_dilated(h, params["conv2_w"], (2, 2), ((1, 1), (1, 1)),
                                 dimension_numbers=dn)
    h = jnp.maximum(h + params["conv2_b"][None, :, None, None], 0.0)
    h = h.reshape(h.shape[0], -1)
    mu = h @ params["fc_mu_w"] + params["fc_mu_b"]
    lv = h @ params["fc_lv_w"] + params["fc_lv_b"]
    z = eps * jnp.exp(0.5 * lv) + mu
    return z, mu, lv


# ----------------------------------------------------------------------------
if __name__ == "__main__":
    key = jax.random.PRNGKey(0)
    k_param, k_img, k_eps = jax.random.split(key, 3)

    params = init_params(k_param)
    packed = pack_params(params)            # ONE-TIME weight repack (hoisted)
    packed = jax.tree_util.tree_map(jax.block_until_ready, packed)

    imgs = jax.random.normal(k_img, (NB, C_IN, IMG, IMG), jnp.float32)   # NCHW

    z_x, means, sigmas = encoder_head_forward(packed, imgs, k_eps)
    jax.block_until_ready((z_x, means, sigmas))

    assert z_x.shape == (NB, Z_DIM)
    assert means.shape == (NB, Z_DIM)
    assert sigmas.shape == (NB, Z_DIM)

    # correctness vs pure-JAX f32 reference (bf16 MXU operands -> loose tolerance)
    eps = jax.random.normal(k_eps, (NB, Z_DIM), jnp.float32)
    z_ref, mu_ref, lv_ref = reference_forward(params, imgs, eps)
    for got, ref, name in ((z_x, z_ref, "z"), (means, mu_ref, "mu"),
                           (sigmas, lv_ref, "logvar")):
        max_err = float(jnp.max(jnp.abs(got - ref)))
        mean_err = float(jnp.mean(jnp.abs(got - ref)))
        assert max_err < 0.1 and mean_err < 0.02, \
            f"{name} mismatch vs reference: max={max_err:.4f} mean={mean_err:.4f}"

    print("KERNEL_OK")
</pallas_src>

<mosaic_0001>
module attributes {stable_mosaic.version = 11 : i64} {
  func.func @_encoder_head_kernel(%arg0: memref<32x144xbf16, #tpu.memory_space<vmem>>, %arg1: memref<144x32xbf16, #tpu.memory_space<vmem>>, %arg2: memref<1x32xf32, #tpu.memory_space<vmem>>, %arg3: memref<288x64xbf16, #tpu.memory_space<vmem>>, %arg4: memref<1x64xf32, #tpu.memory_space<vmem>>, %arg5: memref<256x128xbf16, #tpu.memory_space<vmem>>, %arg6: memref<1x128xf32, #tpu.memory_space<vmem>>, %arg7: memref<2x32xf32, #tpu.memory_space<vmem>>, %arg8: memref<2x128xf32, #tpu.memory_space<vmem>>) attributes {dimension_semantics = [], scalar_prefetch = 0 : i64, scratch_operands = 0 : i64, tpu.core_type = #tpu.core_type<tc>} {
    %c0 = arith.constant 0 : index
    %c0_0 = arith.constant 0 : index
    %0 = vector.load %arg0[%c0, %c0_0] : memref<32x144xbf16, #tpu.memory_space<vmem>>, vector<32x144xbf16>
    %c0_1 = arith.constant 0 : index
    %c0_2 = arith.constant 0 : index
    %1 = vector.load %arg1[%c0_1, %c0_2] : memref<144x32xbf16, #tpu.memory_space<vmem>>, vector<144x32xbf16>
    %cst = arith.constant dense<0.000000e+00> : vector<32x32xf32>
    %2 = tpu.matmul %0, %1, %cst {dimension_numbers = #tpu.dot_dimension_numbers<[1], [0], [0], [1], [0, 0, 1, 1], [], []>} : vector<32x144xbf16>, vector<144x32xbf16>, vector<32x32xf32> -> vector<32x32xf32>
    %c0_3 = arith.constant 0 : index
    %c0_4 = arith.constant 0 : index
    %3 = vector.load %arg2[%c0_3, %c0_4] : memref<1x32xf32, #tpu.memory_space<vmem>>, vector<1x32xf32>
    %4 = vector.broadcast %3 : vector<1x32xf32> to vector<32x32xf32>
    %5 = arith.addf %2, %4 : vector<32x32xf32>
    %cst_5 = arith.constant 0.000000e+00 : f32
    %6 = vector.broadcast %cst_5 : f32 to vector<32x32xf32>
    %7 = arith.maximumf %5, %6 : vector<32x32xf32>
    %8 = vector.extract_strided_slice %7 {offsets = [0, 0], sizes = [8, 32], strides = [1, 1]} : vector<32x32xf32> to vector<8x32xf32>
    %9 = vector.extract_strided_slice %7 {offsets = [8, 0], sizes = [8, 32], strides = [1, 1]} : vector<32x32xf32> to vector<8x32xf32>
    %10 = vector.extract_strided_slice %7 {offsets = [16, 0], sizes = [8, 32], strides = [1, 1]} : vector<32x32xf32> to vector<8x32xf32>
    %11 = vector.extract_strided_slice %7 {offsets = [24, 0], sizes = [8, 32], strides = [1, 1]} : vector<32x32xf32> to vector<8x32xf32>
    %cst_6 = arith.constant 0.000000e+00 : f32
    %12 = vector.broadcast %cst_6 : f32 to vector<2x32xf32>
    %cst_7 = arith.constant 0.000000e+00 : f32
    %13 = vector.broadcast %cst_7 : f32 to vector<8x8xf32>
    %14 = vector.extract_strided_slice %11 {offsets = [0, 0], sizes = [8, 24], strides = [1, 1]} : vector<8x32xf32> to vector<8x24xf32>
    %15 = tpu.concatenate %13, %14 in 1 : vector<8x8xf32>, vector<8x24xf32> -> vector<8x32xf32>
    %16 = vector.extract_strided_slice %15 {offsets = [0, 0], sizes = [6, 32], strides = [1, 1]} : vector<8x32xf32> to vector<6x32xf32>
    %17 = tpu.concatenate %12, %16 in 0 : vector<2x32xf32>, vector<6x32xf32> -> vector<8x32xf32>
    %18 = vector.extract_strided_slice %10 {offsets = [0, 0], sizes = [6, 32], strides = [1, 1]} : vector<8x32xf32> to vector<6x32xf32>
    %19 = tpu.concatenate %12, %18 in 0 : vector<2x32xf32>, vector<6x32xf32> -> vector<8x32xf32>
    %20 = vector.extract_strided_slice %11 {offsets = [0, 0], sizes = [6, 32], strides = [1, 1]} : vector<8x32xf32> to vector<6x32xf32>
    %21 = tpu.concatenate %12, %20 in 0 : vector<2x32xf32>, vector<6x32xf32> -> vector<8x32xf32>
    %22 = vector.extract_strided_slice %9 {offsets = [0, 0], sizes = [8, 24], strides = [1, 1]} : vector<8x32xf32> to vector<8x24xf32>
    %23 = tpu.concatenate %13, %22 in 1 : vector<8x8xf32>, vector<8x24xf32> -> vector<8x32xf32>
    %24 = vector.extract_strided_slice %11 {offsets = [0, 0], sizes = [8, 24], strides = [1, 1]} : vector<8x32xf32> to vector<8x24xf32>
    %25 = tpu.concatenate %13, %24 in 1 : vector<8x8xf32>, vector<8x24xf32> -> vector<8x32xf32>
    %26 = tpu.concatenate %17, %19, %21, %23, %8, %9, %25, %10, %11 in 1 : vector<8x32xf32>, vector<8x32xf32>, vector<8x32xf32>, vector<8x32xf32>, vector<8x32xf32>, vector<8x32xf32>, vector<8x32xf32>, vector<8x32xf32>, vector<8x32xf32> -> vector<8x288xf32>
    %27 = arith.truncf %26 : vector<8x288xf32> to vector<8x288xbf16>
    %c0_8 = arith.constant 0 : index
    %c0_9 = arith.constant 0 : index
    %28 = vector.load %arg3[%c0_8, %c0_9] : memref<288x64xbf16, #tpu.memory_space<vmem>>, vector<288x64xbf16>
    %cst_10 = arith.constant dense<0.000000e+00> : vector<8x64xf32>
    %29 = tpu.matmul %27, %28, %cst_10 {dimension_numbers = #tpu.dot_dimension_numbers<[1], [0], [0], [1], [0, 0, 1, 1], [], []>} : vector<8x288xbf16>, vector<288x64xbf16>, vector<8x64xf32> -> vector<8x64xf32>
    %c0_11 = arith.constant 0 : index
    %c0_12 = arith.constant 0 : index
    %30 = vector.load %arg4[%c0_11, %c0_12] : memref<1x64xf32, #tpu.memory_space<vmem>>, vector<1x64xf32>
    %31 = vector.broadcast %30 : vector<1x64xf32> to vector<8x64xf32>
    %32 = arith.addf %29, %31 : vector<8x64xf32>
    %cst_13 = arith.constant 0.000000e+00 : f32
    %33 = vector.broadcast %cst_13 : f32 to vector<8x64xf32>
    %34 = arith.maximumf %32, %33 : vector<8x64xf32>
    %35 = vector.extract_strided_slice %34 {offsets = [0, 0], sizes = [2, 64], strides = [1, 1]} : vector<8x64xf32> to vector<2x64xf32>
    %36 = vector.extract_strided_slice %34 {offsets = [2, 0], sizes = [2, 64], strides = [1, 1]} : vector<8x64xf32> to vector<2x64xf32>
    %37 = vector.extract_strided_slice %34 {offsets = [4, 0], sizes = [2, 64], strides = [1, 1]} : vector<8x64xf32> to vector<2x64xf32>
    %38 = vector.extract_strided_slice %34 {offsets = [6, 0], sizes = [2, 64], strides = [1, 1]} : vector<8x64xf32> to vector<2x64xf32>
    %39 = tpu.concatenate %35, %36, %37, %38 in 1 : vector<2x64xf32>, vector<2x64xf32>, vector<2x64xf32>, vector<2x64xf32> -> vector<2x256xf32>
    %40 = arith.truncf %39 : vector<2x256xf32> to vector<2x256xbf16>
    %c0_14 = arith.constant 0 : index
    %c0_15 = arith.constant 0 : index
    %41 = vector.load %arg5[%c0_14, %c0_15] : memref<256x128xbf16, #tpu.memory_space<vmem>>, vector<256x128xbf16>
    %cst_16 = arith.constant dense<0.000000e+00> : vector<2x128xf32>
    %42 = tpu.matmul %40, %41, %cst_16 {dimension_numbers = #tpu.dot_dimension_numbers<[1], [0], [0], [1], [0, 0, 1, 1], [], []>} : vector<2x256xbf16>, vector<256x128xbf16>, vector<2x128xf32> -> vector<2x128xf32>
    %c0_17 = arith.constant 0 : index
    %c0_18 = arith.constant 0 : index
    %43 = vector.load %arg6[%c0_17, %c0_18] : memref<1x128xf32, #tpu.memory_space<vmem>>, vector<1x128xf32>
    %44 = vector.broadcast %43 : vector<1x128xf32> to vector<2x128xf32>
    %45 = arith.addf %42, %44 : vector<2x128xf32>
    %46 = vector.extract_strided_slice %45 {offsets = [0, 0], sizes = [2, 32], strides = [1, 1]} : vector<2x128xf32> to vector<2x32xf32>
    %47 = vector.extract_strided_slice %45 {offsets = [0, 32], sizes = [2, 32], strides = [1, 1]} : vector<2x128xf32> to vector<2x32xf32>
    %c0_19 = arith.constant 0 : index
    %c0_20 = arith.constant 0 : index
    %48 = vector.load %arg7[%c0_19, %c0_20] : memref<2x32xf32, #tpu.memory_space<vmem>>, vector<2x32xf32>
    %cst_21 = arith.constant 5.000000e-01 : f32
    %49 = vector.broadcast %cst_21 : f32 to vector<2x32xf32>
    %50 = arith.mulf %49, %47 : vector<2x32xf32>
    %51 = math.exp %50 : vector<2x32xf32>
    %52 = arith.mulf %48, %51 : vector<2x32xf32>
    %53 = arith.addf %52, %46 : vector<2x32xf32>
    %54 = vector.extract_strided_slice %45 {offsets = [0, 0], sizes = [2, 64], strides = [1, 1]} : vector<2x128xf32> to vector<2x64xf32>
    %cst_22 = arith.constant 0.000000e+00 : f32
    %55 = vector.broadcast %cst_22 : f32 to vector<2x32xf32>
    %56 = tpu.concatenate %54, %53, %55 in 1 : vector<2x64xf32>, vector<2x32xf32>, vector<2x32xf32> -> vector<2x128xf32>
    %c0_23 = arith.constant 0 : index
    %c0_24 = arith.constant 0 : index
    %57 = vector.load %arg8[%c0_23, %c0_24] : memref<2x128xf32, #tpu.memory_space<vmem>>, vector<2x128xf32>
    tpu.vector_store %arg8[%c0_23, %c0_24], %56 {strides = array<i32>} : memref<2x128xf32, #tpu.memory_space<vmem>>, vector<2x128xf32>,
    return
  }
}

</mosaic_0001>

<bundles_post_ra>
// kernel: encoder_head_forward.1
= control target key start
LH: loop header
LB: loop body
LE: loop exit
PB: predicated region body
PF: predicated region fallthrough
CT: control target
= control target key end

     0   :  { %v879_v0 = vmov 0   ;;  %vm131_vm0 = vcmask 130048   ;;  %vm200_vm1 = vcmask 1041408   ;;  %s880_s16 = smov 8   ;;  %s881_s19 = smov 32   ;;  %vm195_vm2 = vcmask 64512   ;;  %s1120_s1 = inlined_call_operand.vmem [shape: bf16[144,32], index: 1, kind: input, shape index: {}]   ;;  %s1121_s0 = inlined_call_operand.vmem [shape: bf16[32,144], index: 0, kind: input, shape index: {}]   ;;  %s1122_s2 = inlined_call_operand.vmem [shape: f32[1,32], index: 2, kind: input, shape index: {}]   ;;  %s1123_s3 = inlined_call_operand.vmem [shape: bf16[288,64], index: 3, kind: input, shape index: {}]   ;;  %s1124_s5 = inlined_call_operand.vmem [shape: bf16[256,128], index: 5, kind: input, shape index: {}]   ;;  %s1125_s4 = inlined_call_operand.vmem [shape: f32[1,64], index: 4, kind: input, shape index: {}]   ;;  %s1126_s6 = inlined_call_operand.vmem [shape: f32[1,128], index: 6, kind: input, shape index: {}]   ;;  %s1127_s7 = inlined_call_operand.vmem [shape: f32[2,32], index: 7, kind: input, shape index: {}]   ;;  %s1128_s8 = inlined_call_operand.vmem [shape: f32[2,128], index: 8, kind: output, shape index: {}]  }
   0x1   :  { %138 = vmatprep.subr.bf16.mxu0 %v879_v0  ;;  %v828_v1 = vld [vmem:[%s1120_s1 + $0x38] sm:$0xff]   ;;  %v829_v2 = vld [vmem:[%s1120_s1 + $0x30] sm:$0xff]   ;;  %v830_v3 = vld [vmem:[%s1120_s1 + $0x28] sm:$0xff]   ;;  %v882_v53 = vmov 0.0   ;;  %s883_s17 = smov 64   ;;  %s884_s18 = smov 96  }
   0x2   :  { %139 = vmatpush1.bf16.msra.mxu0 %v828_v1  ;;  %v831_v4 = vld [vmem:[%s1120_s1 + $0x20] sm:$0xff]   ;;  %v832_v6 = vld [vmem:[%s1120_s1 + $0x18] sm:$0xff]   ;;  %v833_v7 = vld [vmem:[%s1120_s1 + $0x10] sm:$0xff]   ;;  %vm235_vm3 = vcmask 261120   ;;  %vm237_vm4 = vcmask 523264   ;;  %vm239_vm5 = vcmask 785408  }
   0x3   :  { %140 = vmatprep.subr.bf16.mxu0 %v879_v0  ;;  %v839_v5 = vld [vmem:[%s1121_s0 + $0x4] ss:$8 sps:$4 sm:$0xff]   ;;  %v837_v11 = vld [vmem:[%s1121_s0] ss:$8 sps:$4 sm:$0xff]   ;;  %v840_v12 = vld [vmem:[%s1121_s0 + $0x14] ss:$8 sps:$4 sm:$0xff]  }
   0x4   :  { %707 = vmatprep.mubr.msk.bf16.mxu0 %vm131_vm0, %v839_v5  ;;  %v834_v8 = vld [vmem:[%s1120_s1 + $0x8] sm:$0xff]   ;;  %v835_v9 = vld [vmem:[%s1120_s1] sm:$0xff]   ;;  %v842_v13 = vld [vmem:[%s1121_s0 + $0x10] ss:$8 sps:$4 sm:$0xff]   ;;  %vm885_vm6 = vmmov 0  }
   0x5   :  { %v836_v10 = vld [vmem:[%s1120_s1 + $0x40] sm:$0xff]   ;;  %v843_v26 = vld [vmem:[%s1123_s3 + $0x78] sm:$0xff]   ;;  %v845_v32 = vld [vmem:[%s1123_s3 + $0x70] sm:$0xff]  }
   0x6   :  { %141 = vmatpush1.bf16.msra.mxu0 %v829_v2  ;;  %v693_v14 = vld [vmem:[%s1122_s2] ss:$0 sm:$0xff]  ;;  %v844_v29 = vld [vmem:[%s1123_s3 + $0x38] sm:$0xff]   ;;  %746 = vmatprep.subr.bf16.mxu1 %v843_v26  ;;  %v846_v36 = vld [vmem:[%s1123_s3 + $0x30] sm:$0xff]  }
   0x7   :  { %142 = vmatprep.subr.bf16.mxu0 %v879_v0  ;;  %747 = vmatpush3.bf16.msra.mxu1 %v844_v29  ;;  %v847_v37 = vld [vmem:[%s1123_s3 + $0x68] sm:$0xff]   ;;  %v849_v39 = vld [vmem:[%s1123_s3 + $0x60] sm:$0xff]   ;;  %v851_v41 = vld [vmem:[%s1123_s3 + $0x58] sm:$0xff]  }
   0x8   :  { %748 = vmatprep.subr.bf16.mxu1 %v845_v32  ;;  %v848_v38 = vld [vmem:[%s1123_s3 + $0x28] sm:$0xff]   ;;  %v850_v40 = vld [vmem:[%s1123_s3 + $0x20] sm:$0xff]   ;;  %v852_v42 = vld [vmem:[%s1123_s3 + $0x18] sm:$0xff]  }
   0x9   :  { %v853_v43 = vld [vmem:[%s1123_s3 + $0x50] sm:$0xff]   ;;  %v855_v45 = vld [vmem:[%s1123_s3 + $0x48] sm:$0xff]   ;;  %v857_v47 = vld [vmem:[%s1123_s3 + $0x40] sm:$0xff]  }
   0xa   :  { %143 = vmatpush1.bf16.msra.mxu0 %v830_v3  ;;  %v854_v44 = vld [vmem:[%s1123_s3 + $0x10] sm:$0xff]   ;;  %v856_v46 = vld [vmem:[%s1123_s3 + $0x8] sm:$0xff]   ;;  %v858_v48 = vld [vmem:[%s1123_s3] sm:$0xff]  }
   0xb   :  { %144 = vmatprep.subr.bf16.mxu0 %v879_v0  ;;  %749 = vmatpush3.bf16.msra.mxu1 %v846_v36  ;;  %v870_v26 = vld [vmem:[%s1124_s5 + $0x18] sm:$0xff]   ;;  %v873_v29 = vld [vmem:[%s1124_s5 + $0x48] sm:$0xff]   ;;  %v875_v36 = vld [vmem:[%s1124_s5 + $0x40] sm:$0xff]  }
   0xc   :  { %750 = vmatprep.subr.bf16.mxu1 %v847_v37  ;;  %v876_v37 = vld [vmem:[%s1124_s5] sm:$0xff]  }
   0xe   :  { %145 = vmatpush1.bf16.msra.mxu0 %v831_v4 }
   0xf   :  { %146 = vmatprep.subr.bf16.mxu0 %v879_v0  ;;  %751 = vmatpush3.bf16.msra.mxu1 %v848_v38 }
  0x10   :  { %752 = vmatprep.subr.bf16.mxu1 %v849_v39 }
  0x12   :  { %147 = vmatpush1.bf16.msra.mxu0 %v832_v6 }
  0x13   :  { %148 = vmatprep.subr.bf16.mxu0 %v879_v0  ;;  %753 = vmatpush3.bf16.msra.mxu1 %v850_v40 }
  0x14   :  { %754 = vmatprep.subr.bf16.mxu1 %v851_v41 }
  0x16   :  { %149 = vmatpush1.bf16.msra.mxu0 %v833_v7 }
  0x17   :  { %150 = vmatprep.subr.bf16.mxu0 %v879_v0  ;;  %755 = vmatpush3.bf16.msra.mxu1 %v852_v42 }
  0x18   :  { %756 = vmatprep.subr.bf16.mxu1 %v853_v43 }
  0x1a   :  { %151 = vmatpush1.bf16.msra.mxu0 %v834_v8 }
  0x1b   :  { %152 = vmatprep.subr.bf16.mxu0 %v879_v0  ;;  %757 = vmatpush3.bf16.msra.mxu1 %v854_v44 }
  0x1c   :  { %758 = vmatprep.subr.bf16.mxu1 %v855_v45 }
  0x1e   :  { %153 = vmatpush1.bf16.msra.mxu0 %v835_v9 }
  0x1f   :  { %168 = vmatprep.subr.bf16.mxu0 %v879_v0  ;;  %759 = vmatpush3.bf16.msra.mxu1 %v856_v46 }
  0x20   :  { %760 = vmatprep.subr.bf16.mxu1 %v857_v47 }
  0x22   :  { %169 = vmatpush2.bf16.msra.mxu0 %v836_v10 }
  0x23   :  { %761 = vmatpush3.bf16.msra.mxu1 %v858_v48 }
  0x24   :  { %793 = vmatprep.subr.bf16.mxu1 %v882_v53 }
  0x25   :  { %171 = vmatmul.mubr.bf16.vlgmr.msra.gmra.mxu0 %v837_v11 }
  0x26   :  { %708 = vmatprep.mubr.msk.bf16.mxu0 %vm131_vm0, %v840_v12 }
  0x2d   :  { %179 = vmatmul.mubr.bf16.gmra.mxu0 %v842_v13 }
  0xe5   :  { %v172_v15 = vpop.f32.mrf.mxu0 }
  0xe6   :  { %v975_v16 = vadd.f32 %v693_v14, %v172_v15  ;;  %v860_v15 = vld [vmem:[%s1123_s3 + $0x80] sm:$0xff]  }
  0xe7   :  { %v174_v17 = vpop.f32.mrf.mxu0 }
  0xe8   :  { %v187_v2 = vmax.f32 %v975_v16, 0.0  ;;  %v861_v17 = vld [vmem:[%s1124_s5 + $0x78] sm:$0xff]  }
  0xe9   :  { %v175_v18 = vpop.f32.mrf.mxu0  ;;  %771 = vmatprep.subr.bf16.mxu0 %v861_v17 }
  0xea   :  { %v176_v22 = vadd.f32 %v693_v14, %v175_v18  ;;  %v862_v18 = vld [vmem:[%s1124_s5 + $0x38] sm:$0xff]  }
  0xeb   :  { %v177_v19 = vpop.f32.mrf.mxu0  ;;  %772 = vmatpush3.bf16.msra.mxu0 %v862_v18 }
  0xec   :  { %v188_v30 = vmax.f32 %v176_v22, 0.0  ;;  %v863_v19 = vld [vmem:[%s1124_s5 + $0x70] sm:$0xff]   ;;  %v866_v22 = vld [vmem:[%s1124_s5 + $0x28] sm:$0xff]  }
  0xed   :  { %v180_v20 = vpop.f32.mrf.mxu0  ;;  %773 = vmatprep.subr.bf16.mxu0 %v863_v19 }
  0xee   :  { %v977_v21 = vadd.f32 %v693_v14, %v180_v20  ;;  %v864_v20 = vld [vmem:[%s1124_s5 + $0x30] sm:$0xff]  }
  0xef   :  { %v182_v23 = vpop.f32.mrf.mxu0  ;;  %774 = vmatpush3.bf16.msra.mxu0 %v864_v20 }
  0xf0   :  { %v189_v24 = vmax.f32 %v977_v21, 0.0  ;;  %v865_v21 = vld [vmem:[%s1124_s5 + $0x68] sm:$0xff]   ;;  %v867_v23 = vld [vmem:[%s1124_s5 + $0x60] sm:$0xff]  }
  0xf1   :  { %v183_v25 = vpop.f32.mrf.mxu0  ;;  %775 = vmatprep.subr.bf16.mxu0 %v865_v21 }
  0xf2   :  { %v203_v27 = vrot.slane %v189_v24, 6  ;;  %v184_v28 = vadd.f32 %v693_v14, %v183_v25  ;;  %v859_v14 = vld [vmem:[%s1123_s3 + $0x88] sm:$0xff]   ;;  %v869_v25 = vld [vmem:[%s1124_s5 + $0x58] sm:$0xff]  }
  0xf3   :  { %v185_v31 = vpop.f32.mrf.mxu0  ;;  %776 = vmatpush3.bf16.msra.mxu0 %v866_v22 }
  0xf4   :  { %v989_v33 = vmax.f32 %v184_v28, 0.0  ;;  %v205_v34 = vsel %vm200_vm1, 0.0, %v203_v27  ;;  %777 = vmatprep.subr.bf16.mxu0 %v867_v23  ;;  %v871_v27 = vld [vmem:[%s1124_s5 + $0x50] sm:$0xff]  }
  0xf5   :  { %v808_v35 = vpack.i.bf16 %v205_v34, %v188_v30  ;;  %v872_v28 = vld [vmem:[%s1124_s5 + $0x10] sm:$0xff]  }
  0xf6   :  { %192 = vrot.lane.b32.xlu0 %v989_v33, %s880_s16  ;;  %v206_v49 = vrot.slane %v989_v33, 6  ;;  %v246_v16 = vpack.c.bf16 %v989_v33, %v989_v33 }
  0xf7   :  { %809 = vrot.lane.b32.xlu1 %v808_v35, %s881_s19  ;;  %v709_v35 = vld [vmem:[%s1125_s4] ss:$0 sm:$0xff] }
  0xf8   :  { %v208_v52 = vsel %vm200_vm1, 0.0, %v206_v49 }
  0xfa   :  { %210 = vrot.lane.b32.xlu0 %v188_v30, %s880_s16  ;;  %v874_v30 = vld [vmem:[%s1124_s5 + $0x8] sm:$0xff]  }
 0x168   :  { %v193_v50 = vpop.permute.xlu0 %192 }
 0x169   :  { %v196_v51 = vsel %vm195_vm2, 0.0, %v193_v50  ;;  %v810_v58 = vpop.permute.xlu1 %809 }
 0x16a   :  { %v813_v54 = vpack.i.bf16 %v208_v52, %v196_v51  ;;  %v198_v59 = vrot.slane %v196_v51, 6  ;;  %v812_v61 = vunpack.i.h.bf16 %v810_v58  ;;  %v811_v62 = vunpack.i.l.bf16 %v810_v58  ;;  %v729_v58 = vld [vmem:[%s1126_s6] ss:$0 sm:$0xff] }
 0x16c   :  { %814 = vrot.lane.b32.xlu1 %v813_v54, %s883_s17  ;;  %v211_v55 = vpop.permute.xlu0 %210  ;;  %v201_v63 = vsel %vm200_vm1, 0.0, %v198_v59  ;;  %v241_v7 = vsel %vm235_vm3, %v187_v2, %v811_v62 }
 0x16d   :  { %v213_v56 = vsel %vm195_vm2, 0.0, %v211_v55  ;;  %v236_v4 = vsel %vm235_vm3, %v201_v63, %v812_v61 }
 0x16e   :  { %v818_v57 = vpack.i.bf16 %v213_v56, %v189_v24  ;;  %v868_v24 = vld [vmem:[%s1124_s5 + $0x20] sm:$0xff]  }
 0x16f   :  { %778 = vmatpush3.bf16.msra.mxu0 %v868_v24 }
 0x170   :  { %819 = vrot.lane.b32.xlu0 %v818_v57, %s884_s18  ;;  %779 = vmatprep.subr.bf16.mxu0 %v869_v25 }
 0x173   :  { %780 = vmatpush3.bf16.msra.mxu0 %v870_v26 }
 0x174   :  { %781 = vmatprep.subr.bf16.mxu0 %v871_v27 }
 0x177   :  { %782 = vmatpush3.bf16.msra.mxu0 %v872_v28 }
 0x178   :  { %783 = vmatprep.subr.bf16.mxu0 %v873_v29 }
 0x17b   :  { %784 = vmatpush3.bf16.msra.mxu0 %v874_v30 }
 0x17c   :  { %785 = vmatprep.subr.bf16.mxu0 %v875_v36 }
 0x17f   :  { %786 = vmatpush3.bf16.msra.mxu0 %v876_v37 }
 0x1de   :  { %v815_v60 = vpop.permute.xlu1 %814 }
 0x1df   :  { %v817_v0 = vunpack.i.h.bf16 %v815_v60  ;;  %v816_v1 = vunpack.i.l.bf16 %v815_v60 }
 0x1e1   :  { %v238_v8 = vsel %vm237_vm4, %v236_v4, %v817_v0  ;;  %v242_v9 = vsel %vm237_vm4, %v241_v7, %v816_v1 }
 0x1e2   :  { %v820_v3 = vpop.permute.xlu0 %819 }
 0x1e3   :  { %v822_v5 = vunpack.i.h.bf16 %v820_v3  ;;  %v821_v6 = vunpack.i.l.bf16 %v820_v3  ;;  %v672_v3 = vld [vmem:[%s1127_s7] sm:$0x3] }
 0x1e5   :  { %v243_v10 = vsel %vm239_vm5, %v242_v9, %v821_v6  ;;  %v240_v11 = vsel %vm239_vm5, %v238_v8, %v822_v5 }
 0x1e6   :  { %v245_v12 = vpack.c.bf16 %v243_v10, %v243_v10  ;;  %v244_v13 = vpack.c.bf16 %v240_v11, %v240_v11 }
 0x1e8   :  { %433 = vmatprep.mubr.bf16.mxu1 %v245_v12 }
 0x1e9   :  { %434 = vmatmul.mubr.bf16.vlgmr.msra.gmra.mxu1 %v244_v13 }
 0x1ea   :  { %794 = vmatpush3.bf16.msra.mxu1 %v859_v14  ;;  %797 = vmatprep.mubr.msk.bf16.mxu1 %vm885_vm6, %v882_v53 }
 0x1eb   :  { %795 = vmatprep.subr.bf16.mxu1 %v882_v53 }
 0x1ee   :  { %796 = vmatpush3.bf16.msra.mxu1 %v860_v15 }
 0x1f1   :  { %798 = vmatmul.mubr.msk.bf16.vlgmr.msra.gmra.mxu1 %vm235_vm3, %v246_v16 }
 0x2a9   :  { %v762_v31 = vpop.f32.mrf.mxu1 }
 0x2ab   :  { %v763_v32 = vpop.f32.mrf.mxu1 }
 0x2ac   :  { %v764_v33 = vadd.f32 %v763_v32, %v762_v31 }
 0x2ad   :  { %v765_v34 = vpop.f32.mrf.mxu1 }
 0x2ae   :  { %v436_v39 = vadd.f32 %v764_v33, %v709_v35 }
 0x2af   :  { %v766_v38 = vpop.f32.mrf.mxu1 }
 0x2b1   :  { %v475_v40 = vpop.f32.mrf.mxu1 }
 0x2b2   :  { %v476_v41 = vadd.f32 %v475_v40, %v436_v39 }
 0x2b3   :  { %v799_v42 = vpop.f32.mrf.mxu1 }
 0x2b4   :  { %v481_v43 = vmax.f32 %v476_v41, 0.0 }
 0x2b5   :  { %v478_v44 = vpop.f32.mrf.mxu1 }
 0x2b6   :  { %v483_v45 = vrot.slane %v481_v43, 2  ;;  %v489_v46 = vrot.slane %v481_v43, 6  ;;  %v487_v52 = vrot.slane %v481_v43, 4 }
 0x2b7   :  { %v800_v47 = vpop.f32.mrf.mxu1 }
 0x2b8   :  { %v823_v48 = vpack.i.bf16 %v483_v45, %v489_v46 }
 0x2ba   :  { %824 = vrot.lane.b32.xlu1 %v823_v48, %s883_s17 }
 0x32c   :  { %v825_v49 = vpop.permute.xlu1 %824 }
 0x32d   :  { %v827_v50 = vunpack.i.h.bf16 %v825_v49  ;;  %v826_v51 = vunpack.i.l.bf16 %v825_v49 }
 0x32f   :  { %v493_v53 = vsel %vm237_vm4, %v481_v43, %v827_v50  ;;  %v494_v54 = vsel %vm237_vm4, %v487_v52, %v826_v51 }
 0x330   :  { %v495_v55 = vpack.c.bf16 %v493_v53, %v493_v53  ;;  %v496_v56 = vpack.c.bf16 %v494_v54, %v494_v54 }
 0x332   :  { %664 = vmatprep.mubr.bf16.mxu0 %v496_v56 }
 0x333   :  { %665 = vmatmul.mubr.bf16.vlgmr.msra.gmra.mxu0 %v495_v55 }
 0x3f3   :  { %v787_v57 = vpop.f32.mrf.mxu0 }
 0x3f5   :  { %v788_v59 = vpop.f32.mrf.mxu0 }
 0x3f6   :  { %v789_v60 = vadd.f32 %v788_v59, %v787_v57 }
 0x3f7   :  { %v790_v61 = vpop.f32.mrf.mxu0 }
 0x3f8   :  { %v667_v62 = vadd.f32 %v789_v60, %v729_v58 }
 0x3f9   :  { %v791_v63 = vpop.f32.mrf.mxu0 }
 0x3fa   :  { %v673_v0 = vmul.f32 0.5, %v667_v62 }
 0x3fc   :  { %v674_v1 = vmul.f32 1.442695, %v673_v0 }
 0x3fe   :  { %877 = vpow2.f32 %v674_v1 }
 0x40b   :  { %v878_v2 = vpop.eup %877 }
 0x40c   :  { %677 = vrot.lane.b32.xlu0 %v878_v2, %s884_s18 }
 0x47e   :  { %v678_v4 = vpop.permute.xlu0 %677 }
 0x47f   :  { %v680_v5 = vmul.f32 %v678_v4, %v672_v3 }
 0x481   :  { %v681_v6 = vadd.f32 %v680_v5, %v667_v62 }
 0x483   :  { %683 = vrot.lane.b32.xlu1 %v681_v6, %s883_s17 }
 0x4f5   :  { %v684_v7 = vpop.permute.xlu1 %683 }
 0x4f6   :  { %v686_v8 = vsel %vm237_vm4, %v667_v62, %v684_v7 }
 0x4f7   :  { %v687_v9 = vsel %vm239_vm5, %v686_v8, 0.0 }
 0x4f8   :  { %688 = vst [vmem:[%s1128_s8] sm:$0x3] %v687_v9 }

</bundles_post_ra>
